<compile_context>
chip_gen: v7x
topology: tpu7x:2x2x1
jax: 0.10.0
libtpu: 0.0.40
codegen_flags: <defaults>
</compile_context>

<pallas_src>
import functools

import jax
import jax.numpy as jnp
from jax.experimental import pallas as pl
from jax.experimental.pallas import tpu as pltpu


def fsda_kernel(mag_ref, pha_ref, wslab_ref, real_ref, imag_ref, *, n_valid):
    C, Npad = mag_ref.shape
    K = wslab_ref.shape[1]
    per_branch = K // 2
    Cr = (per_branch - 2 * C - 2) // 2

    slab = wslab_ref[...]  # (C, K) f32, tiny

    def unpack(off):
        w1 = slab[:, off:off + C]                                    # (C, C)  y = w1 @ x
        b1 = slab[:, off + C:off + C + 1]                            # (C, 1)
        fc1 = slab[:, off + C + 1:off + C + 1 + Cr]                  # (C, Cr) = fc1_pt.T
        fc2 = slab[:, off + C + 1 + Cr:off + C + 1 + 2 * Cr]         # (C, Cr) = fc2_pt
        w2 = slab[:, off + C + 1 + 2 * Cr:off + 2 * C + 1 + 2 * Cr]  # (C, C)
        b2 = slab[:, off + 2 * C + 1 + 2 * Cr:off + 2 * C + 2 + 2 * Cr]  # (C, 1)
        return w1, b1, fc1, fc2, w2, b2

    pad_cnt = Npad - n_valid                      # compile-time int
    inv_n = jnp.float32(1.0 / float(n_valid))

    def lrelu(v):
        # LeakyReLU(0.1): max(v, 0.1*v) is exact for slope in (0, 1).
        return jnp.maximum(v, 0.1 * v)

    def branch(x, w1, b1, fc1, fc2, w2, b2):
        # x: (C, Npad) f32.  Weight-stationary 1x1 conv on the MXU.
        y = jnp.dot(w1, x, preferred_element_type=jnp.float32) + b1        # (C, Npad)
        y = lrelu(y)                                                        # LeakyReLU(0.1)
        # --- SELayer: pooled mean over the true N spectral positions only ---
        # Padded input lanes are exactly zero, so padded y lanes are exactly
        # lrelu(b1); subtract their contribution instead of masking the tensor.
        row_sum = jnp.sum(y, axis=1, keepdims=True)                         # (C, 1)
        if pad_cnt:
            row_sum = row_sum - jnp.float32(pad_cnt) * lrelu(b1)
        avg = row_sum * inv_n                                               # (C, 1)
        # SE FC layers on the VPU/XLU (keeps the MXU free of 1-row tiles).
        s = jnp.sum(fc1 * avg, axis=0, keepdims=True)                       # (1, Cr)
        s = jnp.maximum(s, 0.0)                                             # ReLU
        s = jnp.sum(fc2 * s, axis=1, keepdims=True)                         # (C, 1)
        s = jax.nn.sigmoid(s)
        y = y * s                                                           # channel scaling
        # --- second 1x1 conv + residual ---
        y = jnp.dot(w2, y, preferred_element_type=jnp.float32) + b2         # (C, Npad)
        return x + y

    # Single up-cast after load; all elementwise / trig math stays f32.
    mag = mag_ref[...].astype(jnp.float32)
    pha = pha_ref[...].astype(jnp.float32)

    mag_o = branch(mag, *unpack(0))
    pha_o = branch(pha, *unpack(per_branch))

    real_ref[...] = (mag_o * jnp.cos(pha_o)).astype(real_ref.dtype)
    imag_ref[...] = (mag_o * jnp.sin(pha_o)).astype(imag_ref.dtype)


def pack_weights(params):
    """Pack the 12 PyTorch-shaped weights into one (C, K) f32 slab.

    PyTorch shapes: w1/w2: (C_out, C_in); b1/b2: (C,);
                    fc1: (Cr, C) [Linear(C, Cr)]; fc2: (C, Cr) [Linear(Cr, C)].
    """
    C = params["w1m"].shape[0]

    def branch_cols(sfx):
        return [
            params["w1" + sfx],
            params["b1" + sfx].reshape(C, 1),
            params["fc1" + sfx].T,      # (Cr, C) -> (C, Cr)
            params["fc2" + sfx],        # (C, Cr)
            params["w2" + sfx],
            params["b2" + sfx].reshape(C, 1),
        ]

    cols = branch_cols("m") + branch_cols("p")
    return jnp.concatenate(cols, axis=1).astype(jnp.float32)


def fsda_pallas(x, params, io_dtype=jnp.bfloat16):
    """x: (B, C, H, W) float32 (NCHW, matching the PyTorch module)."""
    B, C, H, W = x.shape
    Wf = W // 2 + 1
    N = H * Wf
    Npad = ((N + 127) // 128) * 128

    x_freq = jnp.fft.rfft2(x, norm="backward")                 # (B, C, H, Wf) complex64
    mag = jnp.abs(x_freq).astype(jnp.float32)
    pha = jnp.angle(x_freq).astype(jnp.float32)

    # (B, C, H, Wf) -> (B, C, N): contiguous reshape, no transpose needed.
    mag_l = mag.reshape(B, C, N)
    pha_l = pha.reshape(B, C, N)
    if Npad != N:
        pad = ((0, 0), (0, 0), (0, Npad - N))
        mag_l = jnp.pad(mag_l, pad)
        pha_l = jnp.pad(pha_l, pad)
    mag_l = mag_l.astype(io_dtype)
    pha_l = pha_l.astype(io_dtype)

    wslab = pack_weights(params)                               # (C, K) f32, one DMA
    K = wslab.shape[1]

    data_spec = pl.BlockSpec((pl.Squeezed(), C, Npad), lambda b: (b, 0, 0))
    w_spec = pl.BlockSpec((C, K), lambda b: (0, 0))

    # Explicit VMEM budget: 4 I/O buffers (double-buffered, bf16) + f32
    # intermediates + weight slab, with headroom; capped for v7x (64 MiB/TC).
    io_bytes = C * Npad * jnp.dtype(io_dtype).itemsize
    vmem_limit = min(64 << 20, max(16 << 20, 16 * io_bytes + (4 << 20)))

    kernel = functools.partial(fsda_kernel, n_valid=N)

    real_p, imag_p = pl.pallas_call(
        kernel,
        out_shape=(jax.ShapeDtypeStruct((B, C, Npad), io_dtype),
                   jax.ShapeDtypeStruct((B, C, Npad), io_dtype)),
        grid_spec=pltpu.PrefetchScalarGridSpec(
            num_scalar_prefetch=0,
            grid=(B,),
            in_specs=[data_spec, data_spec, w_spec],
            out_specs=(data_spec, data_spec),
        ),
        compiler_params=pltpu.CompilerParams(
            dimension_semantics=("parallel",),     # B >= 2 => both v7x TCs busy
            vmem_limit_bytes=vmem_limit,
        ),
    )(mag_l, pha_l, wslab)

    # Drop the lane padding, rebuild the complex spectrum, inverse FFT.
    real = real_p[:, :, :N].astype(jnp.float32).reshape(B, C, H, Wf)
    imag = imag_p[:, :, :N].astype(jnp.float32).reshape(B, C, H, Wf)
    x_out = jax.lax.complex(real, imag)
    return jnp.fft.irfft2(x_out, s=(H, W), norm="backward")


def fsda_ref(x, params):
    """Pure-JAX f32 reference mirroring the PyTorch forward pass."""
    B, C, H, W = x.shape
    x_freq = jnp.fft.rfft2(x, norm="backward")
    mag = jnp.abs(x_freq).astype(jnp.float32)
    pha = jnp.angle(x_freq).astype(jnp.float32)

    hp = jax.lax.Precision.HIGHEST

    def branch(t, w1, b1, fc1, fc2, w2, b2):
        y = jnp.einsum("oi,bihw->bohw", w1, t, precision=hp) + b1[None, :, None, None]
        y = jnp.where(y >= 0, y, 0.1 * y)
        avg = jnp.mean(y, axis=(2, 3))                                  # (B, C)
        s = jnp.maximum(jnp.einsum("ri,bi->br", fc1, avg, precision=hp), 0.0)
        s = jax.nn.sigmoid(jnp.einsum("cr,br->bc", fc2, s, precision=hp))
        y = y * s[:, :, None, None]
        y = jnp.einsum("oi,bihw->bohw", w2, y, precision=hp) + b2[None, :, None, None]
        return t + y

    mag_o = branch(mag, params["w1m"], params["b1m"], params["fc1m"],
                   params["fc2m"], params["w2m"], params["b2m"])
    pha_o = branch(pha, params["w1p"], params["b1p"], params["fc1p"],
                   params["fc2p"], params["w2p"], params["b2p"])
    x_out = jax.lax.complex(mag_o * jnp.cos(pha_o), mag_o * jnp.sin(pha_o))
    return jnp.fft.irfft2(x_out, s=(H, W), norm="backward")


if __name__ == "__main__":
    B, C, H, W = 2, 16, 16, 16          # nc=16 so the SE reduction=16 hidden is 1
    Cr = max(C // 16, 1)

    key = jax.random.PRNGKey(0)
    keys = jax.random.split(key, 13)
    x = jax.random.normal(keys[0], (B, C, H, W), jnp.float32)

    def mk(k, shape, scale=0.1):
        return scale * jax.random.normal(k, shape, jnp.float32)

    # PyTorch-shaped parameters: Conv2d 1x1 weight (C_out, C_in), bias (C,);
    # SE Linear weights (out, in) with no bias.
    params = {
        "w1m": mk(keys[1], (C, C)),   "b1m": mk(keys[2], (C,)),
        "fc1m": mk(keys[3], (Cr, C)), "fc2m": mk(keys[4], (C, Cr)),
        "w2m": mk(keys[5], (C, C)),   "b2m": mk(keys[6], (C,)),
        "w1p": mk(keys[7], (C, C)),   "b1p": mk(keys[8], (C,)),
        "fc1p": mk(keys[9], (Cr, C)), "fc2p": mk(keys[10], (C, Cr)),
        "w2p": mk(keys[11], (C, C)),  "b2p": mk(keys[12], (C,)),
    }

    # jit the wrapper so the FFT pre/post-processing fuses around pallas_call.
    fsda_jit = jax.jit(fsda_pallas)
    out = fsda_jit(x, params)
    out = jax.block_until_ready(out)
    assert out.shape == (B, C, H, W)

    ref = fsda_ref(x, params)
    max_err = float(jnp.max(jnp.abs(out - ref)))
    # Kernel I/O is bf16 (compute in f32): tolerance reflects bf16 quantization
    # of the spectrum; measured error is well below this bound.
    assert max_err < 5e-2, f"max abs error vs reference: {max_err}"

    print("KERNEL_OK")
</pallas_src>

<mosaic_0001>
module attributes {stable_mosaic.version = 11 : i64} {
  func.func @fsda_kernel(%arg0: i32, %arg1: memref<1x16x256xbf16, #tpu.memory_space<vmem>>, %arg2: memref<1x16x256xbf16, #tpu.memory_space<vmem>>, %arg3: memref<16x72xf32, #tpu.memory_space<vmem>>, %arg4: memref<1x16x256xbf16, #tpu.memory_space<vmem>>, %arg5: memref<1x16x256xbf16, #tpu.memory_space<vmem>>) attributes {dimension_semantics = [#tpu.dimension_semantics<parallel>], iteration_bounds = array<i64: 2>, scalar_prefetch = 0 : i64, scratch_operands = 0 : i64, tpu.core_type = #tpu.core_type<tc>, window_params = [{transform_indices = @transform_0, window_bounds = array<i64: 1, 16, 256>}, {transform_indices = @transform_1, window_bounds = array<i64: 1, 16, 256>}, {pipeline_mode = #tpu.pipeline_mode<synchronous>, transform_indices = @transform_2, window_bounds = array<i64: 16, 72>}, {transform_indices = @transform_3, window_bounds = array<i64: 1, 16, 256>}, {transform_indices = @transform_4, window_bounds = array<i64: 1, 16, 256>}]} {
    %c0 = arith.constant 0 : index
    %c0_0 = arith.constant 0 : index
    %0 = vector.load %arg3[%c0, %c0_0] : memref<16x72xf32, #tpu.memory_space<vmem>>, vector<16x72xf32>
    %c0_1 = arith.constant 0 : index
    %c0_2 = arith.constant 0 : index
    %c0_3 = arith.constant 0 : index
    %1 = vector.load %arg1[%c0_1, %c0_2, %c0_3] : memref<1x16x256xbf16, #tpu.memory_space<vmem>>, vector<1x16x256xbf16>
    %2 = vector.shape_cast %1 : vector<1x16x256xbf16> to vector<16x256xbf16>
    %3 = arith.extf %2 : vector<16x256xbf16> to vector<16x256xf32>
    %c0_4 = arith.constant 0 : index
    %c0_5 = arith.constant 0 : index
    %c0_6 = arith.constant 0 : index
    %4 = vector.load %arg2[%c0_4, %c0_5, %c0_6] : memref<1x16x256xbf16, #tpu.memory_space<vmem>>, vector<1x16x256xbf16>
    %5 = vector.shape_cast %4 : vector<1x16x256xbf16> to vector<16x256xbf16>
    %6 = arith.extf %5 : vector<16x256xbf16> to vector<16x256xf32>
    %7 = vector.extract_strided_slice %0 {offsets = [0, 0], sizes = [16, 16], strides = [1, 1]} : vector<16x72xf32> to vector<16x16xf32>
    %8 = vector.extract_strided_slice %0 {offsets = [0, 16], sizes = [16, 1], strides = [1, 1]} : vector<16x72xf32> to vector<16x1xf32>
    %9 = vector.extract_strided_slice %0 {offsets = [0, 17], sizes = [16, 1], strides = [1, 1]} : vector<16x72xf32> to vector<16x1xf32>
    %10 = vector.extract_strided_slice %0 {offsets = [0, 18], sizes = [16, 1], strides = [1, 1]} : vector<16x72xf32> to vector<16x1xf32>
    %11 = vector.extract_strided_slice %0 {offsets = [0, 19], sizes = [16, 16], strides = [1, 1]} : vector<16x72xf32> to vector<16x16xf32>
    %12 = vector.extract_strided_slice %0 {offsets = [0, 35], sizes = [16, 1], strides = [1, 1]} : vector<16x72xf32> to vector<16x1xf32>
    %cst = arith.constant dense<0.000000e+00> : vector<16x256xf32>
    %13 = tpu.matmul %7, %3, %cst {dimension_numbers = #tpu.dot_dimension_numbers<[1], [0], [0], [1], [0, 0, 1, 1], [], []>} : vector<16x16xf32>, vector<16x256xf32>, vector<16x256xf32> -> vector<16x256xf32>
    %14 = vector.broadcast %8 : vector<16x1xf32> to vector<16x256xf32>
    %15 = arith.addf %13, %14 : vector<16x256xf32>
    %cst_7 = arith.constant 1.000000e-01 : f32
    %16 = vector.broadcast %cst_7 : f32 to vector<16x256xf32>
    %17 = arith.mulf %16, %15 : vector<16x256xf32>
    %18 = arith.maximumf %15, %17 : vector<16x256xf32>
    %cst_8 = arith.constant dense<0.000000e+00> : vector<16xf32>
    %19 = vector.multi_reduction <add>, %18, %cst_8 [1] : vector<16x256xf32> to vector<16xf32>
    %20 = vector.shape_cast %19 : vector<16xf32> to vector<16x1xf32>
    %cst_9 = arith.constant 1.000000e-01 : f32
    %21 = vector.broadcast %cst_9 : f32 to vector<16x1xf32>
    %22 = arith.mulf %21, %8 : vector<16x1xf32>
    %23 = arith.maximumf %8, %22 : vector<16x1xf32>
    %cst_10 = arith.constant 1.120000e+02 : f32
    %24 = vector.broadcast %cst_10 : f32 to vector<16x1xf32>
    %25 = arith.mulf %24, %23 : vector<16x1xf32>
    %26 = arith.subf %20, %25 : vector<16x1xf32>
    %cst_11 = arith.constant 0.0069444445 : f32
    %27 = vector.broadcast %cst_11 : f32 to vector<16x1xf32>
    %28 = arith.mulf %26, %27 : vector<16x1xf32>
    %29 = arith.mulf %9, %28 : vector<16x1xf32>
    %cst_12 = arith.constant dense<0.000000e+00> : vector<1xf32>
    %30 = vector.multi_reduction <add>, %29, %cst_12 [0] : vector<16x1xf32> to vector<1xf32>
    %31 = vector.shape_cast %30 : vector<1xf32> to vector<1x1xf32>
    %cst_13 = arith.constant 0.000000e+00 : f32
    %32 = vector.broadcast %cst_13 : f32 to vector<1x1xf32>
    %33 = arith.maximumf %31, %32 : vector<1x1xf32>
    %34 = vector.broadcast %33 : vector<1x1xf32> to vector<16x1xf32>
    %35 = arith.mulf %10, %34 : vector<16x1xf32>
    %cst_14 = arith.constant dense<0.000000e+00> : vector<16xf32>
    %36 = vector.multi_reduction <add>, %35, %cst_14 [1] : vector<16x1xf32> to vector<16xf32>
    %37 = vector.shape_cast %36 : vector<16xf32> to vector<16x1xf32>
    %38 = arith.negf %37 : vector<16x1xf32>
    %39 = math.exp %38 : vector<16x1xf32>
    %cst_15 = arith.constant 1.000000e+00 : f32
    %40 = vector.broadcast %cst_15 : f32 to vector<16x1xf32>
    %41 = arith.addf %40, %39 : vector<16x1xf32>
    %42 = arith.divf %40, %41 : vector<16x1xf32>
    %43 = vector.broadcast %42 : vector<16x1xf32> to vector<16x256xf32>
    %44 = arith.mulf %18, %43 : vector<16x256xf32>
    %cst_16 = arith.constant dense<0.000000e+00> : vector<16x256xf32>
    %45 = tpu.matmul %11, %44, %cst_16 {dimension_numbers = #tpu.dot_dimension_numbers<[1], [0], [0], [1], [0, 0, 1, 1], [], []>} : vector<16x16xf32>, vector<16x256xf32>, vector<16x256xf32> -> vector<16x256xf32>
    %46 = vector.broadcast %12 : vector<16x1xf32> to vector<16x256xf32>
    %47 = arith.addf %45, %46 : vector<16x256xf32>
    %48 = arith.addf %3, %47 : vector<16x256xf32>
    %49 = vector.extract_strided_slice %0 {offsets = [0, 36], sizes = [16, 16], strides = [1, 1]} : vector<16x72xf32> to vector<16x16xf32>
    %50 = vector.extract_strided_slice %0 {offsets = [0, 52], sizes = [16, 1], strides = [1, 1]} : vector<16x72xf32> to vector<16x1xf32>
    %51 = vector.extract_strided_slice %0 {offsets = [0, 53], sizes = [16, 1], strides = [1, 1]} : vector<16x72xf32> to vector<16x1xf32>
    %52 = vector.extract_strided_slice %0 {offsets = [0, 54], sizes = [16, 1], strides = [1, 1]} : vector<16x72xf32> to vector<16x1xf32>
    %53 = vector.extract_strided_slice %0 {offsets = [0, 55], sizes = [16, 16], strides = [1, 1]} : vector<16x72xf32> to vector<16x16xf32>
    %54 = vector.extract_strided_slice %0 {offsets = [0, 71], sizes = [16, 1], strides = [1, 1]} : vector<16x72xf32> to vector<16x1xf32>
    %cst_17 = arith.constant dense<0.000000e+00> : vector<16x256xf32>
    %55 = tpu.matmul %49, %6, %cst_17 {dimension_numbers = #tpu.dot_dimension_numbers<[1], [0], [0], [1], [0, 0, 1, 1], [], []>} : vector<16x16xf32>, vector<16x256xf32>, vector<16x256xf32> -> vector<16x256xf32>
    %56 = vector.broadcast %50 : vector<16x1xf32> to vector<16x256xf32>
    %57 = arith.addf %55, %56 : vector<16x256xf32>
    %cst_18 = arith.constant 1.000000e-01 : f32
    %58 = vector.broadcast %cst_18 : f32 to vector<16x256xf32>
    %59 = arith.mulf %58, %57 : vector<16x256xf32>
    %60 = arith.maximumf %57, %59 : vector<16x256xf32>
    %cst_19 = arith.constant dense<0.000000e+00> : vector<16xf32>
    %61 = vector.multi_reduction <add>, %60, %cst_19 [1] : vector<16x256xf32> to vector<16xf32>
    %62 = vector.shape_cast %61 : vector<16xf32> to vector<16x1xf32>
    %cst_20 = arith.constant 1.000000e-01 : f32
    %63 = vector.broadcast %cst_20 : f32 to vector<16x1xf32>
    %64 = arith.mulf %63, %50 : vector<16x1xf32>
    %65 = arith.maximumf %50, %64 : vector<16x1xf32>
    %cst_21 = arith.constant 1.120000e+02 : f32
    %66 = vector.broadcast %cst_21 : f32 to vector<16x1xf32>
    %67 = arith.mulf %66, %65 : vector<16x1xf32>
    %68 = arith.subf %62, %67 : vector<16x1xf32>
    %cst_22 = arith.constant 0.0069444445 : f32
    %69 = vector.broadcast %cst_22 : f32 to vector<16x1xf32>
    %70 = arith.mulf %68, %69 : vector<16x1xf32>
    %71 = arith.mulf %51, %70 : vector<16x1xf32>
    %cst_23 = arith.constant dense<0.000000e+00> : vector<1xf32>
    %72 = vector.multi_reduction <add>, %71, %cst_23 [0] : vector<16x1xf32> to vector<1xf32>
    %73 = vector.shape_cast %72 : vector<1xf32> to vector<1x1xf32>
    %cst_24 = arith.constant 0.000000e+00 : f32
    %74 = vector.broadcast %cst_24 : f32 to vector<1x1xf32>
    %75 = arith.maximumf %73, %74 : vector<1x1xf32>
    %76 = vector.broadcast %75 : vector<1x1xf32> to vector<16x1xf32>
    %77 = arith.mulf %52, %76 : vector<16x1xf32>
    %cst_25 = arith.constant dense<0.000000e+00> : vector<16xf32>
    %78 = vector.multi_reduction <add>, %77, %cst_25 [1] : vector<16x1xf32> to vector<16xf32>
    %79 = vector.shape_cast %78 : vector<16xf32> to vector<16x1xf32>
    %80 = arith.negf %79 : vector<16x1xf32>
    %81 = math.exp %80 : vector<16x1xf32>
    %cst_26 = arith.constant 1.000000e+00 : f32
    %82 = vector.broadcast %cst_26 : f32 to vector<16x1xf32>
    %83 = arith.addf %82, %81 : vector<16x1xf32>
    %84 = arith.divf %82, %83 : vector<16x1xf32>
    %85 = vector.broadcast %84 : vector<16x1xf32> to vector<16x256xf32>
    %86 = arith.mulf %60, %85 : vector<16x256xf32>
    %cst_27 = arith.constant dense<0.000000e+00> : vector<16x256xf32>
    %87 = tpu.matmul %53, %86, %cst_27 {dimension_numbers = #tpu.dot_dimension_numbers<[1], [0], [0], [1], [0, 0, 1, 1], [], []>} : vector<16x16xf32>, vector<16x256xf32>, vector<16x256xf32> -> vector<16x256xf32>
    %88 = vector.broadcast %54 : vector<16x1xf32> to vector<16x256xf32>
    %89 = arith.addf %87, %88 : vector<16x256xf32>
    %90 = arith.addf %6, %89 : vector<16x256xf32>
    %91 = math.cos %90 : vector<16x256xf32>
    %92 = arith.mulf %48, %91 : vector<16x256xf32>
    %93 = arith.truncf %92 : vector<16x256xf32> to vector<16x256xbf16>
    %c0_28 = arith.constant 0 : index
    %c0_29 = arith.constant 0 : index
    %c0_30 = arith.constant 0 : index
    %94 = vector.load %arg4[%c0_28, %c0_29, %c0_30] : memref<1x16x256xbf16, #tpu.memory_space<vmem>>, vector<1x16x256xbf16>
    %95 = vector.shape_cast %94 : vector<1x16x256xbf16> to vector<16x256xbf16>
    %96 = vector.shape_cast %93 : vector<16x256xbf16> to vector<1x16x256xbf16>
    tpu.vector_store %arg4[%c0_28, %c0_29, %c0_30], %96 {strides = array<i32>} : memref<1x16x256xbf16, #tpu.memory_space<vmem>>, vector<1x16x256xbf16>,
    %97 = math.sin %90 : vector<16x256xf32>
    %98 = arith.mulf %48, %97 : vector<16x256xf32>
    %99 = arith.truncf %98 : vector<16x256xf32> to vector<16x256xbf16>
    %c0_31 = arith.constant 0 : index
    %c0_32 = arith.constant 0 : index
    %c0_33 = arith.constant 0 : index
    %100 = vector.load %arg5[%c0_31, %c0_32, %c0_33] : memref<1x16x256xbf16, #tpu.memory_space<vmem>>, vector<1x16x256xbf16>
    %101 = vector.shape_cast %100 : vector<1x16x256xbf16> to vector<16x256xbf16>
    %102 = vector.shape_cast %99 : vector<16x256xbf16> to vector<1x16x256xbf16>
    tpu.vector_store %arg5[%c0_31, %c0_32, %c0_33], %102 {strides = array<i32>} : memref<1x16x256xbf16, #tpu.memory_space<vmem>>, vector<1x16x256xbf16>,
    return
  }
  func.func @transform_0(%arg0: i32) -> (i32, i32, i32) {
    %c0_i32 = arith.constant 0 : i32
    %c0_i32_0 = arith.constant 0 : i32
    %c0_i32_1 = arith.constant 0 : i32
    return %arg0, %c0_i32, %c0_i32_0 : i32, i32, i32
  }
  func.func @transform_1(%arg0: i32) -> (i32, i32, i32) {
    %c0_i32 = arith.constant 0 : i32
    %c0_i32_0 = arith.constant 0 : i32
    %c0_i32_1 = arith.constant 0 : i32
    return %arg0, %c0_i32, %c0_i32_0 : i32, i32, i32
  }
  func.func @transform_2(%arg0: i32) -> (i32, i32) {
    %c0_i32 = arith.constant 0 : i32
    %c0_i32_0 = arith.constant 0 : i32
    %c0_i32_1 = arith.constant 0 : i32
    return %c0_i32, %c0_i32_0 : i32, i32
  }
  func.func @transform_3(%arg0: i32) -> (i32, i32, i32) {
    %c0_i32 = arith.constant 0 : i32
    %c0_i32_0 = arith.constant 0 : i32
    %c0_i32_1 = arith.constant 0 : i32
    return %arg0, %c0_i32, %c0_i32_0 : i32, i32, i32
  }
  func.func @transform_4(%arg0: i32) -> (i32, i32, i32) {
    %c0_i32 = arith.constant 0 : i32
    %c0_i32_0 = arith.constant 0 : i32
    %c0_i32_1 = arith.constant 0 : i32
    return %arg0, %c0_i32, %c0_i32_0 : i32, i32, i32
  }
}

</mosaic_0001>

<bundles_post_ra>
// kernel: fsda_pallas.1
= control target key start
LH: loop header
LB: loop body
LE: loop exit
PB: predicated region body
PF: predicated region fallthrough
CT: control target
= control target key end

     0   :  { %s1943_s15 = smov 0   ;;  %s2431_s0 = inlined_call_operand.vmem [shape: bf16[2,16,256], index: 0, kind: input, shape index: {}]   ;;  %s2432_s1 = inlined_call_operand.vmem [shape: bf16[2,16,256], index: 1, kind: input, shape index: {}]   ;;  %s2433_s2 = inlined_call_operand.vmem [shape: f32[16,72], index: 2, kind: input, shape index: {}]   ;;  %s2434_s3 = inlined_call_operand.vmem [shape: bf16[2,16,256], index: 3, kind: output, shape index: {0}]   ;;  %s2435_s4 = inlined_call_operand.vmem [shape: bf16[2,16,256], index: 4, kind: output, shape index: {1}]  }
   0x1 LB: > { %s1720_s16 = sadd.s32 4294967295, %s1899_s15   ;;  %p1724_p0 = scmp.ge.s32.totalorder %s1899_s15, 1  ;;  %s1899_s15 = sphi %s1943_s15, %s15_s15  }
   0x2   : > { %p175_p1 = scmp.lt.s32.totalorder %s1899_s15, 3 }
   0x4   : > { %p176_p2 = pnand %p1724_p0, %p175_p1 }
   0x5   : > { %v1954_v0 = vld [vmem:[%s2433_s2] sm:$0xff] (!%p176_p2)  ;;  %p211_p3 = scmp.lt.s32.totalorder (!%p176_p2), %s1720_s16, 1  ;;  %s1901_s19 = smov (!%p176_p2), 92   ;;  %v1902_v1 = vmov (!%p176_p2), 0.0   ;;  %v1961_v2 = vld [vmem:[%s2433_s2 + $0x8] sm:$0xff] (!%p176_p2)  ;;  %v1903_v3 = vmov (!%p176_p2), 16  }
   0x6   : > { %179 = sbr.rel (%p176_p2) target bundleno = 1270 (0x4f6), region = 32  ;;  %521 = vrot.lane.b32.xlu0 (!%p176_p2), %v1954_v0, %s1901_s19  ;;  %324 = vmatprep.mubr.f32.mxu0 (!%p176_p2), %v1902_v1  ;;  %v1904_v4 = vmov (!%p176_p2), 52   ;;  %vm255_vm0 = vcmask (!%p176_p2), 130048   ;;  %v351_v55 = vmul.f32 (!%p176_p2), 0.1, %v1954_v0  ;;  %s1905_s29 = smov (!%p176_p2), 1  }
   0x7   : > { %1844 = vset.pattern.permute.xlu1 (!%p176_p2), %v1903_v3  ;;  %1845 = vset.pattern.permute.xlu0 (!%p176_p2), %v1904_v4  ;;  %v352_v56 = vmul.f32 (!%p176_p2), 0.1, %v1961_v2  ;;  %vm371_vm1 = vcmask (!%p176_p2), 146568   ;;  %vm634_vm2 = vcmask (!%p176_p2), 441768   ;;  %s1908_s30 = smov (!%p176_p2), 109   ;;  %s1909_s5 = smov (!%p176_p2), 73  }
   0x8   : > { %247 = vperm.xlu1 (!%p176_p2), %1844, %v1954_v0   ;;  %496 = vmatprep.mubr.f32.mxu1 (!%p176_p2), %v1902_v1  ;;  %v353_v57 = vmax.f32 (!%p176_p2), %v1954_v0, %v351_v55 }
   0x9   : > { %v354_v58 = vmax.f32 (!%p176_p2), %v1961_v2, %v352_v56 }
   0xa   : > { %523 = vrot.lane.b32.xlu0 (!%p176_p2), %v1961_v2, %s1901_s19  ;;  %v355_v59 = vmul.f32 (!%p176_p2), 112.0, %v353_v57 }
   0xb   : > { %v356_v61 = vmul.f32 (!%p176_p2), 112.0, %v354_v58 }
   0xc   : > { %252 = vperm.xlu1 (!%p176_p2), %1844, %v1961_v2  }
   0xd   : > { %s2439_s16 = smov (!%p211_p3, %s1720_s16), 1 }
   0xe   : > { %s1965_s22 = sshll.u32 %s2439_s16, 4  ;;  %514 = vperm.xlu0 %1845, %v1954_v0  }
   0xf   : > { %s1972_s25 = scalar_lea.vmem %s2431_s0, %s1965_s22  ;;  %s220_s28 = scalar_lea.vmem %s2432_s1, %s1965_s22 }
  0x10   : > { %v1975_v5 = vld [vmem:[%s1972_s25] sm:$0xff]  ;;  %v234_v6 = vld [vmem:[%s1972_s25 + $0x8] sm:$0xff]  ;;  %1846 = vset.pattern.permute.xlu1 %v1904_v4  ;;  %s2394_s8 = scalar_lea.vmem %s2434_s3, %s1965_s22  ;;  %s2400_s11 = scalar_lea.vmem %s2435_s4, %s1965_s22 }
  0x11   : > { %v1799_v7 = vcombine.high %v1975_v5, %v234_v6  ;;  %v1800_v8 = vcombine.low %v1975_v5, %v234_v6  ;;  %v1985_v9 = vld [vmem:[%s220_s28] sm:$0xff]  ;;  %v1987_v10 = vld [vmem:[%s220_s28 + $0x8] sm:$0xff]  ;;  %518 = vperm.xlu1 %1846, %v1961_v2  }
  0x12   : > { %v1801_v11 = vcombine.high %v1985_v9, %v1987_v10  ;;  %v1802_v12 = vcombine.low %v1985_v9, %v1987_v10 }
  0x13   : > { %1784 = vmatprep.subr.bf16.mxu0 %v1799_v7 }
  0x14   : > { %1786 = vmatpush1.bf16.msra.mxu0 %v1800_v8 }
  0x15   : > { %1792 = vmatprep.subr.bf16.mxu0 %v1801_v11 }
  0x17   : > { %1733 = vmatmul.mubr.msk.f32.vlgmr.msra.gmra.mrb[0].mxu0 %vm255_vm0, %v1954_v0 }
  0x18   : > { %330 = vmatprep.mubr.f32.mxu0 %v1902_v1  ;;  %1794 = vmatpush1.bf16.msra.mxu0 %v1802_v12 }
  0x1b   : > { %1734 = vmatmul.mubr.msk.f32.gmra.mrb[2].mxu0 %vm255_vm0, %v1961_v2 }
  0x1c   : > { %593 = vmatprep.mubr.f32.mxu0 %v1902_v1 }
  0x78   : > { %v522_v13 = vpop.permute.xlu0 %521 }
  0x79   : > { %1739 = vmatmul.mubr.msk.f32.vlgmr.msra.gmra.mrb[4].mxu0 %vm255_vm0, %v522_v13 }
  0x7a   : > { %599 = vmatprep.mubr.f32.mxu0 %v1902_v1 }
  0x7c   : > { %v524_v14 = vpop.permute.xlu0 %523 }
  0x7d   : > { %1740 = vmatmul.mubr.msk.f32.gmra.mrb[6].mxu0 %vm255_vm0, %v524_v14 }
  0x87   : > { %v248_v15 = vpop.permute.xlu1 %247 }
  0x8b   : > { %v253_v20 = vpop.permute.xlu1 %252 }
  0x8d   : > { %v515_v35 = vpop.permute.xlu0 %514 }
  0x90   : > { %v519_v40 = vpop.permute.xlu1 %518 }
  0xea   : > { %v326_v16 = vpop.f32.mrb[0].mxu0 }
  0xeb   : > { %v327_v17 = vadd.f32 %v326_v16, %v248_v15  ;;  %v328_v18 = vpop.f32.mrb[1].mxu0 }
  0xec   : > { %v329_v19 = vadd.f32 %v328_v18, %v248_v15 }
  0xed   : > { %v337_v21 = vmul.f32 0.1, %v327_v17 }
  0xee   : > { %v338_v22 = vmul.f32 0.1, %v329_v19  ;;  %v332_v23 = vpop.f32.mrb[2].mxu0 }
  0xef   : > { %v2004_v24 = vmax.f32 %v327_v17, %v337_v21  ;;  %v333_v25 = vadd.f32 %v332_v23, %v253_v20  ;;  %v334_v26 = vpop.f32.mrb[3].mxu0 }
  0xf0   : > { %v2006_v27 = vmax.f32 %v329_v19, %v338_v22  ;;  %v335_v28 = vadd.f32 %v334_v26, %v253_v20 }
  0xf1   : > { %v339_v29 = vmul.f32 0.1, %v333_v25 }
  0xf2   : > { %v340_v30 = vmul.f32 0.1, %v335_v28  ;;  %v345_v31 = vadd.f32 %v2006_v27, %v2004_v24 }
  0xf3   : > { %v2010_v32 = vmax.f32 %v333_v25, %v339_v29 }
  0xf4   : > { %v2012_v33 = vmax.f32 %v335_v28, %v340_v30  ;;  %346 = vadd.xlane.f32.xlu1 %v345_v31  ;;  %v1906_v31 = vmov 18  }
  0xf5   : > { %1847 = vset.pattern.permute.xlu1 %v1906_v31  ;;  %1848 = vset.pattern.permute.xlu0 %v1906_v31 }
  0xf6   : > { %v348_v34 = vadd.f32 %v2012_v33, %v2010_v32 }
  0xf8   : > { %349 = vadd.xlane.f32.xlu0 %v348_v34 }
 0x14c   : > { %v595_v36 = vpop.f32.mrb[4].mxu0 }
 0x14d   : > { %v596_v37 = vadd.f32 %v595_v36, %v515_v35  ;;  %v597_v38 = vpop.f32.mrb[5].mxu0 }
 0x14e   : > { %v598_v39 = vadd.f32 %v597_v38, %v515_v35 }
 0x14f   : > { %v606_v41 = vmul.f32 0.1, %v596_v37 }
 0x150   : > { %v607_v42 = vmul.f32 0.1, %v598_v39  ;;  %v601_v43 = vpop.f32.mrb[6].mxu0 }
 0x151   : > { %v2016_v44 = vmax.f32 %v596_v37, %v606_v41  ;;  %v602_v45 = vadd.f32 %v601_v43, %v519_v40  ;;  %v603_v46 = vpop.f32.mrb[7].mxu0 }
 0x152   : > { %v2018_v47 = vmax.f32 %v598_v39, %v607_v42  ;;  %v604_v48 = vadd.f32 %v603_v46, %v519_v40 }
 0x153   : > { %v608_v49 = vmul.f32 0.1, %v602_v45 }
 0x154   : > { %v609_v50 = vmul.f32 0.1, %v604_v48  ;;  %v614_v51 = vadd.f32 %v2018_v47, %v2016_v44 }
 0x155   : > { %v2022_v52 = vmax.f32 %v602_v45, %v608_v49 }
 0x156   : > { %v2024_v53 = vmax.f32 %v604_v48, %v609_v50  ;;  %615 = vadd.xlane.f32.xlu0 %v614_v51 }
 0x158   : > { %v617_v54 = vadd.f32 %v2024_v53, %v2022_v52 }
 0x15a   : > { %618 = vadd.xlane.f32.xlu1 %v617_v54 }
 0x181   : > { %v347_v60 = vpop.xlane.xlu1 %346 }
 0x182   : > { %v357_v62 = vsub.f32 %v347_v60, %v355_v59 }
 0x184   : > { %v359_v63 = vmul.f32 0.0069444445, %v357_v62 }
 0x185   : > { %v350_v3 = vpop.xlane.xlu0 %349 }
 0x186   : > { %v358_v4 = vsub.f32 %v350_v3, %v356_v61  ;;  %363 = vrot.lane.b32.xlu0 %v359_v63, %s1905_s29  ;;  %v1907_v63 = vmov 54  }
 0x188   : > { %v360_v6 = vmul.f32 0.0069444445, %v358_v4 }
 0x18a   : > { %365 = vrot.lane.b32.xlu1 %v360_v6, %s1905_s29 }
 0x1e3   : > { %v616_v7 = vpop.xlane.xlu0 %615 }
 0x1e4   : > { %v620_v8 = vsub.f32 %v616_v7, %v355_v59 }
 0x1e6   : > { %v622_v11 = vmul.f32 0.0069444445, %v620_v8 }
 0x1e7   : > { %v619_v12 = vpop.xlane.xlu1 %618 }
 0x1e8   : > { %v621_v13 = vsub.f32 %v619_v12, %v356_v61  ;;  %626 = vrot.lane.b32.xlu1 %v622_v11, %s1905_s29 }
 0x1ea   : > { %v623_v14 = vmul.f32 0.0069444445, %v621_v13 }
 0x1ec   : > { %628 = vrot.lane.b32.xlu0 %v623_v14, %s1905_s29 }
 0x1f8   : > { %v364_v15 = vpop.permute.xlu0 %363 }
 0x1f9   : > { %v369_v16 = vmul.f32 %v364_v15, %v1954_v0 }
 0x1fb   : > { %v372_v18 = vsel %vm371_vm1, %v369_v16, 0.0 }
 0x1fc   : > { %v366_v17 = vpop.permute.xlu1 %365 }
 0x1fd   : > { %v370_v19 = vmul.f32 %v366_v17, %v1961_v2  ;;  %v1910_v17 = vmov 71  }
 0x1ff   : > { %v373_v20 = vsel %vm371_vm1, %v370_v19, 0.0 }
 0x200   : > { %v374_v21 = vadd.f32 %v373_v20, %v372_v18  ;;  %v1911_v18 = vmov 35  }
 0x202   : > { %v375_v22 = vrot.slane %v374_v21, 4 }
 0x204   : > { %v376_v23 = vadd.f32 %v375_v22, %v374_v21 }
 0x206   : > { %v377_v25 = vrot.slane %v376_v23, 2 }
 0x208   : > { %v378_v26 = vadd.f32 %v377_v25, %v376_v23 }
 0x20a   : > { %v379_v28 = vrot.slane %v378_v26, 1 }
 0x20c   : > { %v380_v29 = vadd.f32 %v379_v28, %v378_v26 }
 0x20e   : > { %v381_v30 = vmax.f32 %v380_v29, 0.0 }
 0x210   : > { %383 = vrot.lane.b32.xlu1 %v381_v30, %s1905_s29 }
 0x25a   : > { %v627_v34 = vpop.permute.xlu1 %626 }
 0x25b   : > { %v632_v35 = vmul.f32 %v627_v34, %v1954_v0 }
 0x25d   : > { %v635_v38 = vsel %vm634_vm2, %v632_v35, 0.0 }
 0x25e   : > { %v629_v36 = vpop.permute.xlu0 %628 }
 0x25f   : > { %v633_v37 = vmul.f32 %v629_v36, %v1961_v2 }
 0x261   : > { %v636_v39 = vsel %vm634_vm2, %v633_v37, 0.0  ;;  %v241_v37 = vunpack.c.l.bf16 %v1985_v9 }
 0x262   : > { %v637_v40 = vadd.f32 %v636_v39, %v635_v38 }
 0x264   : > { %v638_v41 = vrot.slane %v637_v40, 4 }
 0x266   : > { %v639_v42 = vadd.f32 %v638_v41, %v637_v40  ;;  %v242_v40 = vunpack.c.h.bf16 %v1985_v9 }
 0x268   : > { %v640_v43 = vrot.slane %v639_v42, 2 }
 0x26a   : > { %v641_v45 = vadd.f32 %v640_v43, %v639_v42 }
 0x26c   : > { %v642_v46 = vrot.slane %v641_v45, 1 }
 0x26e   : > { %v643_v48 = vadd.f32 %v642_v46, %v641_v45 }
 0x270   : > { %v644_v49 = vmax.f32 %v643_v48, 0.0 }
 0x272   : > { %646 = vrot.lane.b32.xlu0 %v644_v49, %s1905_s29 }
 0x282   : > { %v384_v50 = vpop.permute.xlu1 %383 }
 0x283   : > { %v386_v51 = vmul.f32 %v384_v50, %v1954_v0  ;;  %v387_v54 = vmul.f32 %v384_v50, %v1961_v2  ;;  %v243_v50 = vunpack.c.l.bf16 %v1987_v10 }
 0x285   : > { %v1735_v55 = vmul.f32 -1.442695, %v386_v51  ;;  %v1736_v56 = vmul.f32 -1.442695, %v387_v54 }
 0x287   : > { %1859 = vpow2.f32 %v1735_v55 }
 0x288   : > { %1861 = vpow2.f32 %v1736_v56 }
 0x291   : > { %v1860_v57 = vpop.eup %1859 }
 0x292   : > { %v1862_v58 = vpop.eup %1861  ;;  %v396_v59 = vadd.f32 1.0, %v1860_v57 }
 0x293   : > { %v397_v60 = vadd.f32 1.0, %v1862_v58 }
 0x294   : > { %1863 = vrcp.f32 %v396_v59 }
 0x295   : > { %1865 = vrcp.f32 %v397_v60 }
 0x29e   : > { %v1864_v61 = vpop.eup %1863 }
 0x29f   : > { %v1866_v62 = vpop.eup %1865  ;;  %404 = vperm.xlu1 %1847, %v1864_v61  }
 0x2a0   : > { %409 = vperm.xlu0 %1848, %v1866_v62  }
 0x2a3   : > { %1849 = vset.pattern.permute.xlu1 %v1907_v63 }
 0x2a4   : > { %424 = vrot.lane.b32.xlu0 %v1954_v0, %s1908_s30 }
 0x2a5   : > { %1850 = vset.pattern.permute.xlu0 %v1910_v17 }
 0x2a8   : > { %687 = vrot.lane.b32.xlu0 %v1954_v0, %s1909_s5 }
 0x2ac   : > { %680 = vperm.xlu0 %1850, %v1954_v0  }
 0x2b0   : > { %1853 = vset.pattern.permute.xlu0 %v1911_v18 }
 0x2b1   : > { %421 = vperm.xlu0 %1853, %v1961_v2  }
 0x2b5   : > { %1854 = vset.pattern.permute.xlu0 %v1910_v17 }
 0x2e4   : > { %v647_v3 = vpop.permute.xlu0 %646 }
 0x2e5   : > { %v649_v4 = vmul.f32 %v647_v3, %v1954_v0  ;;  %v650_v6 = vmul.f32 %v647_v3, %v1961_v2 }
 0x2e7   : > { %v1741_v7 = vmul.f32 -1.442695, %v649_v4  ;;  %v1742_v8 = vmul.f32 -1.442695, %v650_v6 }
 0x2e9   : > { %1867 = vpow2.f32 %v1741_v7 }
 0x2ea   : > { %1869 = vpow2.f32 %v1742_v8 }
 0x2f3   : > { %v1868_v11 = vpop.eup %1867 }
 0x2f4   : > { %v1870_v12 = vpop.eup %1869  ;;  %v659_v13 = vadd.f32 1.0, %v1868_v11 }
 0x2f5   : > { %v660_v14 = vadd.f32 1.0, %v1870_v12 }
 0x2f6   : > { %1871 = vrcp.f32 %v659_v13 }
 0x2f7   : > { %1873 = vrcp.f32 %v660_v14 }
 0x300   : > { %v1872_v15 = vpop.eup %1871 }
 0x301   : > { %667 = vperm.xlu1 %1849, %v1872_v15   ;;  %v1874_v16 = vpop.eup %1873 }
 0x305   : > { %672 = vperm.xlu1 %1849, %v1874_v16  }
 0x309   : > { %426 = vrot.lane.b32.xlu1 %v1961_v2, %s1908_s30 }
 0x30a   : > { %1851 = vset.pattern.permute.xlu1 %v1910_v17 }
 0x30d   : > { %689 = vrot.lane.b32.xlu1 %v1961_v2, %s1909_s5 }
 0x311   : > { %684 = vperm.xlu1 %1851, %v1961_v2  }
 0x315   : > { %1852 = vset.pattern.permute.xlu1 %v1911_v18 }
 0x316   : > { %417 = vperm.xlu1 %1852, %v1954_v0  }
 0x31e   : > { %v405_v19 = vpop.permute.xlu1 %404 }
 0x31f   : > { %v410_v20 = vpop.permute.xlu0 %409  ;;  %v412_v21 = vmul.f32 %v405_v19, %v2004_v24  ;;  %v413_v22 = vmul.f32 %v405_v19, %v2006_v27 }
 0x320   : > { %v414_v23 = vmul.f32 %v410_v20, %v2010_v32  ;;  %v415_v25 = vmul.f32 %v410_v20, %v2012_v33  ;;  %v1912_v20 = vmov 683565275  }
 0x322   : > { %v1787_v26 = vpack.c.bf16 %v415_v25, %v413_v22  ;;  %v1789_v28 = vpack.c.bf16 %v414_v23, %v412_v21  ;;  %v1913_v25 = vmov 2475754826  }
 0x323   : > { %v425_v29 = vpop.permute.xlu0 %424 }
 0x324   : > { %1788 = vmatprep.subr.bf16.mxu1 %v1787_v26 }
 0x325   : > { %1790 = vmatpush1.bf16.msra.mxu1 %v1789_v28  ;;  %v1914_v28 = vmov 2131351028  }
 0x327   : > { %v688_v35 = vpop.permute.xlu0 %687 }
 0x328   : > { %1737 = vmatmul.mubr.msk.f32.vlgmr.msra.gmra.mrb[0].mxu1 %vm255_vm0, %v425_v29 }
 0x329   : > { %502 = vmatprep.mubr.f32.mxu1 %v1902_v1 }
 0x32b   : > { %v681_v38 = vpop.permute.xlu0 %680 }
 0x380   : > { %v668_v0 = vpop.permute.xlu1 %667 }
 0x381   : > { %v675_v24 = vmul.f32 %v668_v0, %v2016_v44  ;;  %v676_v27 = vmul.f32 %v668_v0, %v2018_v47  ;;  %v1915_v0 = vmov 2102212464  }
 0x384   : > { %v673_v2 = vpop.permute.xlu1 %672 }
 0x385   : > { %v677_v32 = vmul.f32 %v673_v2, %v2022_v52  ;;  %v678_v33 = vmul.f32 %v673_v2, %v2024_v53 }
 0x387   : > { %v1795_v30 = vpack.c.bf16 %v678_v33, %v676_v27  ;;  %v1797_v31 = vpack.c.bf16 %v677_v32, %v675_v24  ;;  %v1916_v24 = vmov 920167782  }
 0x388   : > { %v427_v34 = vpop.permute.xlu1 %426 }
 0x389   : > { %1738 = vmatmul.mubr.msk.f32.gmra.mrb[2].mxu1 %vm255_vm0, %v427_v34  ;;  %1796 = vmatprep.subr.bf16.mxu1 %v1795_v30 }
 0x38a   : > { %1798 = vmatpush1.bf16.msra.mxu1 %v1797_v31  ;;  %759 = vmatprep.mubr.f32.mxu1 %v1902_v1 }
 0x38c   : > { %v690_v44 = vpop.permute.xlu1 %689 }
 0x38d   : > { %1743 = vmatmul.mubr.msk.f32.vlgmr.msra.gmra.mrb[4].mxu1 %vm255_vm0, %v688_v35  ;;  %v1917_v35 = vmov 1326507024  }
 0x38e   : > { %765 = vmatprep.mubr.f32.mxu1 %v1902_v1 }
 0x390   : > { %v2088_v54 = vpop.permute.xlu1 %684 }
 0x391   : > { %1744 = vmatmul.mubr.msk.f32.gmra.mrb[6].mxu1 %vm255_vm0, %v690_v44 }
 0x3fb   : > { %v2069_v47 = vpop.f32.mrb[0].mxu1 }
 0x3fc   : > { %v2071_v52 = vpop.f32.mrb[1].mxu1 }
 0x45c   : > { %v2073_v53 = vpop.f32.mrb[2].mxu1 }
 0x45d   : > { %v2075_v36 = vpop.f32.mrb[3].mxu1 }
 0x460   : > { %v761_v39 = vpop.f32.mrb[4].mxu1 }
 0x461   : > { %v762_v41 = vadd.f32 %v761_v39, %v681_v38  ;;  %v763_v42 = vpop.f32.mrb[5].mxu1 }
 0x462   : > { %v764_v1 = vadd.f32 %v763_v42, %v681_v38 }
 0x463   : > { %v2079_v43 = vadd.f32 %v762_v41, %v241_v37 }
 0x464   : > { %v2081_v45 = vadd.f32 %v764_v1, %v242_v40  ;;  %v767_v46 = vpop.f32.mrb[6].mxu1 }
 0x465   : > { %v776_v48 = vand.u32 2147483647, %v2079_v43  ;;  %v779_v49 = vand.u32 2139095040, %v2079_v43  ;;  %v2086_v51 = vpop.f32.mrb[7].mxu1  ;;  %v768_v57 = vadd.f32 %v767_v46, %v2088_v54 }
 0x466   : > { %v879_v9 = vand.u32 2147483647, %v2081_v45  ;;  %v882_v55 = vand.u32 2139095040, %v2081_v45 }
 0x467   : > { %v780_v56 = vshrl.u32 %v779_v49, 23  ;;  %v783_v58 = vand.u32 8388607, %v776_v48  ;;  %v2097_v62 = vadd.f32 %v768_v57, %v243_v50 }
 0x468   : > { %v883_v59 = vshrl.u32 %v882_v55, 23  ;;  %v886_v60 = vand.u32 8388607, %v879_v9 }
 0x469   : > { %v1745_v61 = vadd.s32 4294967169, %v780_v56  ;;  %v784_v4 = vor.u32 8388608, %v783_v58  ;;  %v985_v8 = vand.u32 2139095040, %v2097_v62 }
 0x46a   : > { %v1749_v63 = vadd.s32 4294967169, %v883_v59  ;;  %v887_v6 = vor.u32 8388608, %v886_v60 }
 0x46b   : > { %v786_v3 = vadd.s32 1, %v1745_v61  ;;  %v986_v12 = vshrl.u32 %v985_v8, 23  ;;  %v2100_v16 = vshll.u32 %v784_v4, 8 }
 0x46c   : > { %v889_v7 = vadd.s32 1, %v1749_v63  ;;  %v2104_v18 = vshll.u32 %v887_v6, 8 }
 0x46d   : > { %vm787_vm3 = vcmp.gt.s32.totalorder %v786_v3, 0  ;;  %v2107_v23 = vadd.s32 4294967169, %v986_v12 }
 0x46e   : > { %v788_v11 = vsel %vm787_vm3, %v786_v3, 0  ;;  %vm890_vm4 = vcmp.gt.s32.totalorder %v889_v7, 0 }
 0x46f   : > { %v789_v13 = vshrl.u32 %v788_v11, 5  ;;  %v790_v14 = vand.u32 31, %v788_v11  ;;  %v891_v15 = vsel %vm890_vm4, %v889_v7, 0 }
 0x470   : > { %v2102_v17 = vshrl.u32 %v891_v15, 5  ;;  %v893_v22 = vand.u32 31, %v891_v15 }
 0x471   : > { %v791_v19 = vsub.s32 32, %v790_v14  ;;  %v793_v21 = vshll.u32 %v1912_v20, %v790_v14  ;;  %v796_v26 = vshll.u32 %v1913_v25, %v790_v14  ;;  %v799_v29 = vshll.u32 %v1914_v28, %v790_v14 }
 0x472   : > { %v802_v2 = vshll.u32 %v1915_v0, %v790_v14  ;;  %v805_v27 = vshll.u32 %v1916_v24, %v790_v14  ;;  %vm808_vm5 = vcmp.lt.s32.totalorder %v789_v13, 1  ;;  %vm809_vm6 = vcmp.lt.s32.totalorder %v789_v13, 2 }
 0x473   : > { %v794_v32 = vshrl.u32 %v1913_v25, %v791_v19  ;;  %v797_v33 = vshrl.u32 %v1914_v28, %v791_v19  ;;  %v800_v30 = vshrl.u32 %v1915_v0, %v791_v19  ;;  %v792_v31 = vshrl.u32 %v1912_v20, %v791_v19 }
 0x474   : > { %v803_v34 = vshrl.u32 %v1916_v24, %v791_v19  ;;  %v806_v44 = vshrl.u32 %v1917_v35, %v791_v19  ;;  %v894_v40 = vsub.s32 32, %v893_v22  ;;  %vm810_vm7 = vcmp.lt.s32.totalorder %v789_v13, 3 }
 0x475   : > { %v795_v37 = vor.u32 %v794_v32, %v793_v21  ;;  %v798_v38 = vor.u32 %v797_v33, %v796_v26  ;;  %v801_v39 = vor.u32 %v800_v30, %v799_v29  ;;  %vm811_vm8 = vcmp.lt.s32.totalorder %v789_v13, 4 }
 0x476   : > { %v804_v41 = vor.u32 %v803_v34, %v802_v2  ;;  %v807_v42 = vor.u32 %v806_v44, %v805_v27  ;;  %v896_v58 = vshll.u32 %v1912_v20, %v893_v22  ;;  %v897_v61 = vshrl.u32 %v1913_v25, %v894_v40 }
 0x477   : > { %v812_v1 = vsel %vm808_vm5, %v792_v31, %v795_v37  ;;  %v813_v46 = vsel %vm811_vm8, %v801_v39, 2102212464  ;;  %v816_v49 = vsel %vm808_vm5, %v795_v37, %v798_v38  ;;  %v820_v50 = vsel %vm808_vm5, %v798_v38, %v801_v39 }
 0x478   : > { %v814_v55 = vsel %vm810_vm7, %v798_v38, %v813_v46  ;;  %v817_v56 = vsel %vm811_vm8, %v804_v41, 920167782  ;;  %v821_v57 = vsel %vm811_vm8, %v807_v42, 1326507024  ;;  %v899_v63 = vshll.u32 %v1913_v25, %v893_v22 }
 0x479   : > { %v818_v59 = vsel %vm810_vm7, %v801_v39, %v817_v56  ;;  %v822_v60 = vsel %vm810_vm7, %v804_v41, %v821_v57  ;;  %v815_v3 = vsel %vm809_vm6, %v812_v1, %v814_v55  ;;  %v900_v7 = vshrl.u32 %v1914_v28, %v894_v40 }
 0x47a   : > { %v819_v4 = vsel %vm809_vm6, %v816_v49, %v818_v59  ;;  %v823_v6 = vsel %vm809_vm6, %v820_v50, %v822_v60  ;;  %v898_v15 = vor.u32 %v897_v61, %v896_v58  ;;  %v902_v21 = vshll.u32 %v1914_v28, %v893_v22 }
 0x47b   : > { %v2130_v8 = vmul.u32.u64.low %v2100_v16, %v823_v6  ;;  %v2131_v11 = vmul.u32.u64.high %v2100_v16, %v823_v6, %v2130_v8  ;;  %v2134_v12 = vmul.u32.u64.low %v2100_v16, %v819_v4  ;;  %v2135_v14 = vmul.u32.u64.high %v2100_v16, %v819_v4, %v2134_v12 }
 0x47c   : > { %v901_v19 = vor.u32 %v900_v7, %v899_v63  ;;  %v903_v26 = vshrl.u32 %v1915_v0, %v894_v40  ;;  %v895_v13 = vshrl.u32 %v1912_v20, %v894_v40  ;;  %v905_v29 = vshll.u32 %v1915_v0, %v893_v22 }
 0x47d   : > { %v906_v2 = vshrl.u32 %v1916_v24, %v894_v40  ;;  %v909_v27 = vshrl.u32 %v1917_v35, %v894_v40  ;;  %v831_v32 = vmul.u32 %v2100_v16, %v815_v3  ;;  %v908_v30 = vshll.u32 %v1916_v24, %v893_v22 }
 0x47e   : > { %v904_v33 = vor.u32 %v903_v26, %v902_v21  ;;  %vm911_vm9 = vcmp.lt.s32.totalorder %v2102_v17, 1  ;;  %vm833_vm10 = vc.u32 %v2131_v11, %v2134_v12  ;;  %v834_v31 = vadd.s32 1, %v2135_v14 }
 0x47f   : > { %v907_v34 = vor.u32 %v906_v2, %v905_v29  ;;  %vm912_vm11 = vcmp.lt.s32.totalorder %v2102_v17, 2  ;;  %v910_v44 = vor.u32 %v909_v27, %v908_v30  ;;  %vm913_vm12 = vcmp.lt.s32.totalorder %v2102_v17, 3 }
 0x480   : > { %vm914_vm13 = vcmp.lt.s32.totalorder %v2102_v17, 4  ;;  %v919_v37 = vsel %vm911_vm9, %v898_v15, %v901_v19  ;;  %v835_v16 = vsel %vm833_vm10, %v834_v31, %v2135_v14  ;;  %v923_v39 = vsel %vm911_vm9, %v901_v19, %v904_v33 }
 0x481   : > { %v916_v38 = vsel %vm914_vm13, %v904_v33, 2102212464  ;;  %v920_v22 = vsel %vm914_vm13, %v907_v34, 920167782  ;;  %v836_v40 = vadd.s32 %v835_v16, %v831_v32  ;;  %v915_v41 = vsel %vm911_vm9, %v895_v13, %v898_v15 }
 0x482   : > { %v921_v42 = vsel %vm913_vm12, %v904_v33, %v920_v22  ;;  %v924_v1 = vsel %vm914_vm13, %v910_v44, 1326507024  ;;  %v917_v46 = vsel %vm913_vm12, %v901_v19, %v916_v38  ;;  %v992_v55 = vadd.s32 1, %v2107_v23 }
 0x483   : > { %v922_v49 = vsel %vm912_vm11, %v919_v37, %v921_v42  ;;  %v925_v50 = vsel %vm913_vm12, %v907_v34, %v924_v1  ;;  %v837_v56 = vadd.s32 536870912, %v836_v40  ;;  %v918_v3 = vsel %vm912_vm11, %v915_v41, %v917_v46 }
 0x484   : > { %v926_v57 = vsel %vm912_vm11, %v923_v39, %v925_v50  ;;  %v2160_v58 = vmul.u32.u64.low %v2104_v18, %v922_v49  ;;  %v2161_v59 = vmul.u32.u64.high %v2104_v18, %v922_v49, %v2160_v58  ;;  %vm993_vm14 = vcmp.gt.s32.totalorder %v992_v55, 0 }
 0x485   : > { %v2165_v60 = vmul.u32.u64.low %v2104_v18, %v926_v57  ;;  %v2166_v61 = vmul.u32.u64.high %v2104_v18, %v926_v57, %v2165_v60  ;;  %v2168_v63 = vshrl.u32 %v837_v56, 30  ;;  %v994_v23 = vsel %vm993_vm14, %v992_v55, 0 }
 0x486   : > { %v937_v6 = vadd.s32 1, %v2161_v59  ;;  %v934_v7 = vmul.u32 %v2104_v18, %v918_v3  ;;  %v982_v15 = vand.u32 2147483647, %v2097_v62  ;;  %v996_v19 = vand.u32 31, %v994_v23 }
 0x487   : > { %v839_v4 = vshll.u32 %v2168_v63, 30  ;;  %vm936_vm15 = vc.u32 %v2166_v61, %v2160_v58  ;;  %v244_v17 = vunpack.c.h.bf16 %v1987_v10  ;;  %v770_v26 = vadd.f32 %v2086_v51, %v2088_v54 }
 0x488   : > { %v938_v14 = vsel %vm936_vm15, %v937_v6, %v2161_v59  ;;  %v989_v18 = vand.u32 8388607, %v982_v15  ;;  %v997_v27 = vsub.s32 32, %v996_v19  ;;  %v832_v31 = vadd.s32 %v2134_v12, %v2131_v11 }
 0x489   : > { %v840_v8 = vsub.s32 %v836_v40, %v839_v4  ;;  %v939_v21 = vadd.s32 %v938_v14, %v934_v7  ;;  %v2184_v32 = vadd.f32 %v770_v26, %v244_v17  ;;  %v2191_v51 = vshrl.u32 %v994_v23, 5 }
 0x48a   : > { %v990_v10 = vor.u32 8388608, %v989_v18  ;;  %v1009_v44 = vshrl.u32 %v1916_v24, %v997_v27  ;;  %v1000_v54 = vshrl.u32 %v1913_v25, %v997_v27  ;;  %v1003_v37 = vshrl.u32 %v1914_v28, %v997_v27 }
 0x48b   : > { %v842_v13 = vsub.s32 0, %v840_v8  ;;  %v940_v29 = vadd.s32 536870912, %v939_v21  ;;  %v1088_v16 = vand.u32 2139095040, %v2184_v32  ;;  %v999_v38 = vshll.u32 %v1912_v20, %v996_v19 }
 0x48c   : > { %v1006_v22 = vshrl.u32 %v1915_v0, %v997_v27  ;;  %v1008_v39 = vshll.u32 %v1915_v0, %v996_v19  ;;  %v1002_v40 = vshll.u32 %v1913_v25, %v996_v19  ;;  %v1012_v41 = vshrl.u32 %v1917_v35, %v997_v27 }
 0x48d   : > { %v1746_v2 = vmin.u32 %v842_v13, %v840_v8  ;;  %v2186_v30 = vshrl.u32 %v940_v29, 30  ;;  %v1005_v46 = vshll.u32 %v1914_v28, %v996_v19  ;;  %v1001_v50 = vor.u32 %v1000_v54, %v999_v38 }
 0x48e   : > { %v1010_v49 = vor.u32 %v1009_v44, %v1008_v39  ;;  %v1004_v55 = vor.u32 %v1003_v37, %v1002_v40  ;;  %v1011_v56 = vshll.u32 %v1916_v24, %v996_v19  ;;  %v1030_v57 = vshll.u32 %v990_v10, 8 }
 0x48f   : > { %v844_v33 = vclz %v1746_v2  ;;  %v942_v12 = vshll.u32 %v2186_v30, 30  ;;  %v1007_v23 = vor.u32 %v1006_v22, %v1005_v46  ;;  %vm1017_vm1 = vcmp.lt.s32.totalorder %v2191_v51, 4 }
 0x490   : > { %v1013_v6 = vor.u32 %v1012_v41, %v1011_v56  ;;  %v1089_v7 = vshrl.u32 %v1088_v16, 23  ;;  %vm1014_vm2 = vcmp.lt.s32.totalorder %v2191_v51, 1  ;;  %v1023_v26 = vsel %vm1017_vm1, %v1010_v49, 920167782 }
 0x491   : > { %v1747_v34 = vadd.s32 4294967294, %v844_v33  ;;  %v2204_v4 = vsub.s32 %v939_v21, %v942_v12  ;;  %v862_v19 = vsub.s32 4, %v2168_v63  ;;  %vm1016_vm3 = vcmp.lt.s32.totalorder %v2191_v51, 3 }
 0x492   : > { %v1022_v21 = vsel %vm1014_vm2, %v1001_v50, %v1004_v55  ;;  %vm1015_vm4 = vcmp.lt.s32.totalorder %v2191_v51, 2  ;;  %v1024_v29 = vsel %vm1016_vm3, %v1007_v23, %v1023_v26  ;;  %v1026_v2 = vsel %vm1014_vm2, %v1004_v55, %v1007_v23 }
 0x493   : > { %vm1748_vm0 = vcmp.lt.s32.totalorder %v1747_v34, 0  ;;  %v945_v33 = vsub.s32 0, %v2204_v4  ;;  %v1025_v10 = vsel %vm1015_vm4, %v1022_v21, %v1024_v29  ;;  %v1757_v54 = vadd.s32 4294967169, %v1089_v7 }
 0x494   : > { %v847_v11 = vsel %vm1748_vm0, 0, %v1747_v34  ;;  %vm778_vm5 = vcmp.lt.s32.totalorder %v2079_v43, 0  ;;  %vm777_vm6 = vcmp.le.f32.partialorder %v776_v48, 0.7853982  ;;  %v235_v7 = vunpack.c.l.bf16 %v1975_v5 }
 0x495   : > { %v848_v42 = vsub.s32 32, %v847_v11  ;;  %v852_v1 = vsub.s32 4294967266, %v847_v11  ;;  %v849_v59 = vshll.u32 %v840_v8, %v847_v11  ;;  %v998_v8 = vshrl.u32 %v1912_v20, %v997_v27 }
 0x496   : > { %v1019_v27 = vsel %vm1017_vm1, %v1007_v23, 2102212464  ;;  %v863_v12 = vsel %vm778_vm5, %v862_v19, %v2168_v63  ;;  %v1750_v40 = vmin.u32 %v945_v33, %v2204_v4  ;;  %v1095_v46 = vadd.s32 1, %v1757_v54 }
 0x497   : > { %v850_v60 = vshrl.u32 %v832_v31, %v848_v42  ;;  %v853_v3 = vadd.s32 127, %v852_v1  ;;  %v1027_v31 = vsel %vm1017_vm1, %v1013_v6, 1326507024  ;;  %v1018_v37 = vsel %vm1014_vm2, %v998_v8, %v1001_v50 }
 0x498   : > { %v1028_v44 = vsel %vm1016_vm3, %v1010_v49, %v1027_v31  ;;  %v1020_v22 = vsel %vm1016_vm3, %v1004_v55, %v1019_v27  ;;  %v2241_v41 = vmul.u32.u64.low %v1030_v57, %v1025_v10  ;;  %v2242_v42 = vmul.u32.u64.high %v1030_v57, %v1025_v10, %v2241_v41 }
 0x499   : > { %v851_v14 = vor.u32 %v850_v60, %v849_v59  ;;  %v854_v17 = vshll.u32 %v853_v3, 23  ;;  %v1029_v16 = vsel %vm1015_vm4, %v1026_v2, %v1028_v44  ;;  %v1021_v49 = vsel %vm1015_vm4, %v1018_v37, %v1020_v22  ;;  %v2253_v60 = vpop.permute.xlu1 %417 }
 0x49a   : > { %v2236_v39 = vmul.u32.u64.low %v1030_v57, %v1029_v16  ;;  %v2237_v11 = vmul.u32.u64.high %v1030_v57, %v1029_v16, %v2236_v39  ;;  %v865_v55 = vsel %vm777_vm6, 0, %v863_v12  ;;  %vm1096_vm8 = vcmp.gt.s32.totalorder %v1095_v46, 0 }
 0x49b   : > { %v855_v13 = vor.u32 4788187, %v854_v17  ;;  %v858_v18 = vcvt.s32.f32 %v851_v14  ;;  %v947_v56 = vclz %v1750_v40  ;;  %v1040_v59 = vadd.s32 1, %v2242_v42 }
 0x49c   : > { %vm1039_vm7 = vc.u32 %v2237_v11, %v2241_v41  ;;  %v1037_v3 = vmul.u32 %v1030_v57, %v1021_v49  ;;  %v1097_v23 = vsel %vm1096_vm8, %v1095_v46, 0  ;;  %v1289_v48 = vadd.s32 3, %v865_v55 }
 0x49d   : > { %v856_v34 = vand.u32 2147483647, %v855_v13  ;;  %v1041_v51 = vsel %vm1039_vm7, %v1040_v59, %v2242_v42  ;;  %v499_v14 = vadd.f32 %v2069_v47, %v2253_v60  ;;  %v1751_v17 = vadd.s32 4294967294, %v947_v56 }
 0x49e   : > { %v1042_v6 = vadd.s32 %v1041_v51, %v1037_v3  ;;  %v1099_v26 = vand.u32 31, %v1097_v23  ;;  %v869_v19 = vand.u32 3, %v865_v55  ;;  %v1085_v21 = vand.u32 2147483647, %v2184_v32 }
 0x49f   : > { %v859_v38 = vmul.f32 %v858_v18, %v856_v34  ;;  %v1290_v13 = vand.u32 3, %v1289_v48  ;;  %v509_v57 = vadd.f32 %v499_v14, %v235_v7  ;;  %vm868_vm9 = vweird.f32 %v2079_v43 }
 0x4a0   : > { %v1043_v8 = vadd.s32 536870912, %v1042_v6  ;;  %vm1752_vm10 = vcmp.lt.s32.totalorder %v1751_v17, 0  ;;  %v2263_v2 = vsub.s32 32, %v1099_v26  ;;  %vm870_vm11 = vcmp.lt.s32.totalorder %v869_v19, 2 }
 0x4a1   : > { %v860_v1 = vxor.u32 2147483648, %v859_v38  ;;  %vm871_vm12 = vcmp.eq.s32.totalorder %v869_v19, 0  ;;  %v2268_v47 = vand.u32 8388607, %v1085_v21  ;;  %vm874_vm13 = vcmp.eq.s32.totalorder %v869_v19, 2 }
 0x4a2   : > { %v2260_v29 = vshrl.u32 %v1043_v8, 30  ;;  %vm1291_vm14 = vcmp.lt.s32.totalorder %v1290_v13, 2  ;;  %vm1292_vm15 = vcmp.eq.s32.totalorder %v1290_v13, 0  ;;  %vm1295_vm0 = vcmp.eq.s32.totalorder %v1290_v13, 2 }
 0x4a3   : > { %v861_v50 = vsel %vm778_vm5, %v860_v1, %v859_v38  ;;  %v2270_v33 = vsel %vm1752_vm10, 0, %v1751_v17  ;;  %v2274_v31 = vshrl.u32 %v1097_v23, 5  ;;  %v1105_v34 = vshll.u32 %v1913_v25, %v1099_v26 }
 0x4a4   : > { %v864_v63 = vsel %vm777_vm6, %v2079_v43, %v861_v50  ;;  %v1045_v5 = vshll.u32 %v2260_v29, 30  ;;  %v1108_v54 = vshll.u32 %v1914_v28, %v1099_v26  ;;  %v1112_v37 = vshrl.u32 %v1916_v24, %v2263_v2 }
 0x4a5   : > { %1875 = vcosq.f32 %v864_v63  ;;  %v1115_v16 = vshrl.u32 %v1917_v35, %v2263_v2  ;;  %v1111_v39 = vshll.u32 %v1915_v0, %v1099_v26  ;;  %v1114_v12 = vshll.u32 %v1916_v24, %v1099_v26 }
 0x4a6   : > { %1877 = vsinq.f32 %v864_v63  ;;  %v2272_v27 = vsub.s32 %v1042_v6, %v1045_v5  ;;  %v1106_v1 = vshrl.u32 %v1914_v28, %v2263_v2  ;;  %v1109_v46 = vshrl.u32 %v1915_v0, %v2263_v2 }
 0x4a7   : > { %v1103_v55 = vshrl.u32 %v1913_v25, %v2263_v2  ;;  %v1113_v56 = vor.u32 %v1112_v37, %v1111_v39  ;;  %v1116_v59 = vor.u32 %v1115_v16, %v1114_v12  ;;  %v1102_v23 = vshll.u32 %v1912_v20, %v1099_v26 }
 0x4a8   : > { %v1048_v22 = vsub.s32 0, %v2272_v27  ;;  %v1107_v25 = vor.u32 %v1106_v1, %v1105_v34  ;;  %v1110_v6 = vor.u32 %v1109_v46, %v1108_v54  ;;  %vm1120_vm1 = vcmp.lt.s32.totalorder %v2274_v31, 4 }
 0x4a9   : > { %v1104_v14 = vor.u32 %v1103_v55, %v1102_v23  ;;  %v1126_v17 = vsel %vm1120_vm1, %v1113_v56, 920167782  ;;  %v1130_v43 = vsel %vm1120_vm1, %v1116_v59, 1326507024  ;;  %v955_v19 = vsub.s32 4294967266, %v2270_v33 }
 0x4aa   : > { %v1754_v50 = vmin.u32 %v1048_v22, %v2272_v27  ;;  %vm1117_vm3 = vcmp.lt.s32.totalorder %v2274_v31, 1  ;;  %vm1119_vm4 = vcmp.lt.s32.totalorder %v2274_v31, 3  ;;  %v1093_v8 = vor.u32 8388608, %v2268_v47 }
 0x4ab   : > { %v1129_v13 = vsel %vm1117_vm3, %v1107_v25, %v1110_v6  ;;  %v1038_v5 = vadd.s32 %v2241_v41, %v2237_v11  ;;  %v1125_v34 = vsel %vm1117_vm3, %v1104_v14, %v1107_v25  ;;  %vm1118_vm5 = vcmp.lt.s32.totalorder %v2274_v31, 2 }
 0x4ac   : > { %v1050_v3 = vclz %v1754_v50  ;;  %v1122_v47 = vsel %vm1120_vm1, %v1110_v6, 2102212464  ;;  %v1101_v37 = vshrl.u32 %v1912_v20, %v2263_v2  ;;  %v1133_v22 = vshll.u32 %v1093_v8, 8 }
 0x4ad   : > { %v956_v39 = vadd.s32 127, %v955_v19  ;;  %v951_v46 = vsub.s32 32, %v2270_v33  ;;  %v935_v50 = vadd.s32 %v2160_v58, %v2166_v61  ;;  %vm984_vm7 = vcmp.lt.s32.totalorder %v2097_v62, 0 }
 0x4ae   : > { %v1755_v7 = vadd.s32 4294967294, %v1050_v3  ;;  %v1121_v12 = vsel %vm1117_vm3, %v1101_v37, %v1104_v14  ;;  %v1068_v3 = vsub.s32 4, %v2260_v29  ;;  %vm983_vm8 = vcmp.le.f32.partialorder %v982_v15, 0.7853982 }
 0x4af   : > { %v1876_v18 = vpop.eup %1875  ;;  %v957_v55 = vshll.u32 %v956_v39, 23  ;;  %v953_v59 = vshrl.u32 %v935_v50, %v951_v46  ;;  %vm2378_vm10 = vcmp.le.f32.partialorder %v879_v9, 0.7853982  ;;  %vm1087_vm3 = vcmp.lt.s32.totalorder %v2184_v32, 0 }
 0x4b0   : > { %v1878_v10 = vpop.eup %1877  ;;  %v875_v44 = vxor.u32 2147483648, %v1876_v18  ;;  %vm1756_vm2 = vcmp.lt.s32.totalorder %v1755_v7, 0 }
 0x4b1   : > { %v872_v38 = vxor.u32 2147483648, %v1878_v10  ;;  %v1053_v26 = vsel %vm1756_vm2, 0, %v1755_v7  ;;  %v958_v58 = vor.u32 4788187, %v957_v55  ;;  %vm1074_vm2 = vweird.f32 %v2097_v62 }
 0x4b2   : > { %v876_v40 = vsel %vm874_vm13, %v875_v44, %v1878_v10  ;;  %v1297_v42 = vsel %vm1295_vm0, %v875_v44, %v1878_v10  ;;  %v1127_v10 = vsel %vm1119_vm4, %v1110_v6, %v1126_v17  ;;  %v1058_v44 = vsub.s32 4294967266, %v1053_v26 }
 0x4b3   : > { %v873_v49 = vsel %vm871_vm12, %v1876_v18, %v872_v38  ;;  %v1294_v35 = vsel %vm1292_vm15, %v1876_v18, %v872_v38  ;;  %v1054_v18 = vsub.s32 32, %v1053_v26  ;;  %v1055_v41 = vshll.u32 %v2272_v27, %v1053_v26 }
 0x4b4   : > { %v877_v24 = vsel %vm870_vm11, %v873_v49, %v876_v40  ;;  %v1298_v63 = vsel %vm1291_vm14, %v1294_v35, %v1297_v42  ;;  %v1059_v16 = vadd.s32 127, %v1058_v44  ;;  %v1128_v38 = vsel %vm1118_vm5, %v1125_v34, %v1127_v10  ;;  %v2370_v34 = vld [vmem:[%s1972_s25 + $0x8] sm:$0xff] }
 0x4b5   : > { %v878_v28 = vsel %vm868_vm9, nan, %v877_v24  ;;  %v1299_v0 = vsel %vm868_vm9, nan, %v1298_v63  ;;  %v1056_v54 = vshrl.u32 %v1038_v5, %v1054_v18  ;;  %v1123_v40 = vsel %vm1119_vm4, %v1107_v25, %v1122_v47 }
 0x4b6   : > { %v2303_v48 = vmul.f32 %v878_v28, %v509_v57  ;;  %v2305_v51 = vmul.f32 %v1299_v0, %v509_v57  ;;  %v1131_v57 = vsel %vm1119_vm4, %v1113_v56, %v1130_v43  ;;  %v1060_v1 = vshll.u32 %v1059_v16, 23 }
 0x4b7   : > { %v1132_v11 = vsel %vm1118_vm5, %v1129_v13, %v1131_v57  ;;  %v1057_v42 = vor.u32 %v1056_v54, %v1055_v41  ;;  %v2344_v27 = vmul.u32.u64.low %v1133_v22, %v1128_v38  ;;  %v2345_v49 = vmul.u32.u64.high %v1133_v22, %v1128_v38, %v2344_v27  ;;  %v2367_v57 = vpop.permute.xlu0 %421 }
 0x4b8   : > { %v2340_v20 = vmul.u32.u64.low %v1133_v22, %v1132_v11  ;;  %v2341_v2 = vmul.u32.u64.high %v1133_v22, %v1132_v11, %v2340_v20  ;;  %v1061_v35 = vor.u32 4788187, %v1060_v1  ;;  %v1124_v24 = vsel %vm1118_vm5, %v1121_v12, %v1123_v40 }
 0x4b9   : > { %v1064_v56 = vcvt.s32.f32 %v1057_v42  ;;  %v1143_v28 = vadd.s32 1, %v2345_v49  ;;  %v1140_v23 = vmul.u32 %v1133_v22, %v1124_v24  ;;  %v952_v25 = vshll.u32 %v2204_v4, %v2270_v33 }
 0x4ba   : > { %v1062_v63 = vand.u32 2147483647, %v1061_v35  ;;  %vm1142_vm6 = vc.u32 %v2341_v2, %v2344_v27  ;;  %v1069_v17 = vsel %vm984_vm7, %v1068_v3, %v2260_v29  ;;  %v959_v19 = vand.u32 2147483647, %v958_v58 }
 0x4bb   : > { %v1144_v61 = vsel %vm1142_vm6, %v1143_v28, %v2345_v49  ;;  %v954_v7 = vor.u32 %v953_v59, %v952_v25  ;;  %v1071_v8 = vsel %vm983_vm8, 0, %v1069_v17  ;;  %v237_v29 = vunpack.c.l.bf16 %v2370_v34 }
 0x4bc   : > { %v1065_v0 = vmul.f32 %v1064_v56, %v1062_v63  ;;  %v1145_v6 = vadd.s32 %v1144_v61, %v1140_v23  ;;  %v1497_v15 = vadd.s32 3, %v1071_v8  ;;  %v505_v10 = vadd.f32 %v2073_v53, %v2367_v57 }
 0x4bd   : > { %v961_v33 = vcvt.s32.f32 %v954_v7  ;;  %v1075_v54 = vand.u32 3, %v1071_v8  ;;  %vm881_vm9 = vcmp.lt.s32.totalorder %v2081_v45, 0  ;;  %v1141_v63 = vadd.s32 %v2344_v27, %v2341_v2 }
 0x4be   : > { %v1066_v31 = vxor.u32 2147483648, %v1065_v0  ;;  %v1146_v43 = vadd.s32 536870912, %v1145_v6  ;;  %v1498_v37 = vand.u32 3, %v1497_v15  ;;  %v511_v16 = vadd.f32 %v505_v10, %v237_v29 }
 0x4bf   : > { %v962_v5 = vmul.f32 %v961_v33, %v959_v19  ;;  %vm1076_vm11 = vcmp.lt.s32.totalorder %v1075_v54, 2  ;;  %vm1080_vm12 = vcmp.eq.s32.totalorder %v1075_v54, 2  ;;  %vm1077_vm14 = vcmp.eq.s32.totalorder %v1075_v54, 0 }
 0x4c0   : > { %v1067_v14 = vsel %vm984_vm7, %v1066_v31, %v1065_v0  ;;  %v2364_v4 = vshrl.u32 %v1146_v43, 30  ;;  %vm1503_vm13 = vcmp.eq.s32.totalorder %v1498_v37, 2  ;;  %vm1500_vm15 = vcmp.eq.s32.totalorder %v1498_v37, 0 }
 0x4c1   : > { %v1070_v26 = vsel %vm983_vm8, %v2097_v62, %v1067_v14  ;;  %v963_v47 = vxor.u32 2147483648, %v962_v5  ;;  %vm1499_vm0 = vcmp.lt.s32.totalorder %v1498_v37, 2  ;;  %v965_v62 = vsub.s32 4, %v2186_v30 }
 0x4c2   : > { %1879 = vcosq.f32 %v1070_v26  ;;  %v1148_v13 = vshll.u32 %v2364_v4, 30  ;;  %vm1086_vm4 = vcmp.le.f32.partialorder %v1085_v21, 0.7853982 }
 0x4c3   : > { %1881 = vsinq.f32 %v1070_v26  ;;  %v964_v53 = vsel %vm881_vm9, %v963_v47, %v962_v5 }
 0x4c4   : > { %v1149_v18 = vsub.s32 %v1145_v6, %v1148_v13  ;;  %v967_v59 = vsel %vm2378_vm10, %v2081_v45, %v964_v53  ;;  %v966_v6 = vsel %vm881_vm9, %v965_v62, %v2186_v30 }
 0x4c5   : > { %1883 = vcosq.f32 %v967_v59 }
 0x4c6   : > { %v1151_v44 = vsub.s32 0, %v1149_v18  ;;  %1885 = vsinq.f32 %v967_v59 }
 0x4c8   : > { %v1758_v11 = vmin.u32 %v1151_v44, %v1149_v18 }
 0x4ca   : > { %v1153_v38 = vclz %v1758_v11 }
 0x4cc   : > { %v1880_v41 = vpop.eup %1879  ;;  %v1759_v42 = vadd.s32 4294967294, %v1153_v38 }
 0x4cd   : > { %v1882_v22 = vpop.eup %1881  ;;  %v1081_v12 = vxor.u32 2147483648, %v1880_v41 }
 0x4ce   : > { %v1078_v40 = vxor.u32 2147483648, %v1882_v22  ;;  %vm1760_vm1 = vcmp.lt.s32.totalorder %v1759_v42, 0 }
 0x4cf   : > { %v1082_v1 = vsel %vm1080_vm12, %v1081_v12, %v1882_v22  ;;  %v1505_v20 = vsel %vm1503_vm13, %v1081_v12, %v1882_v22  ;;  %v1156_v50 = vsel %vm1760_vm1, 0, %v1759_v42  ;;  %v1884_v33 = vpop.eup %1883 }
 0x4d0   : > { %v1079_v46 = vsel %vm1077_vm14, %v1880_v41, %v1078_v40  ;;  %v1502_v9 = vsel %vm1500_vm15, %v1880_v41, %v1078_v40  ;;  %v1157_v56 = vsub.s32 32, %v1156_v50  ;;  %v1161_v3 = vsub.s32 4294967266, %v1156_v50  ;;  %v1886_v8 = vpop.eup %1885 }
 0x4d1   : > { %v1083_v49 = vsel %vm1076_vm11, %v1079_v46, %v1082_v1  ;;  %v1506_v35 = vsel %vm1499_vm0, %v1502_v9, %v1505_v20  ;;  %v1158_v25 = vshll.u32 %v1149_v18, %v1156_v50  ;;  %v975_v29 = vxor.u32 2147483648, %v1886_v8 }
 0x4d2   : > { %v1084_v55 = vsel %vm1074_vm2, nan, %v1083_v49  ;;  %v1507_v24 = vsel %vm1074_vm2, nan, %v1506_v35  ;;  %v1159_v2 = vshrl.u32 %v1141_v63, %v1157_v56  ;;  %v1162_v58 = vadd.s32 127, %v1161_v3 }
 0x4d3   : > { %v1190_v28 = vmul.f32 %v1084_v55, %v511_v16  ;;  %v1614_v0 = vmul.f32 %v1507_v24, %v511_v16  ;;  %v978_v10 = vxor.u32 2147483648, %v1884_v33  ;;  %v501_v16 = vadd.f32 %v2071_v52, %v2253_v60 }
 0x4d4   : > { %v1160_v61 = vor.u32 %v1159_v2, %v1158_v25  ;;  %v1163_v31 = vshll.u32 %v1162_v58, 23  ;;  %v238_v40 = vunpack.c.h.bf16 %v2370_v34  ;;  %vm971_vm11 = vweird.f32 %v2081_v45 }
 0x4d5   : > { %v1192_v27 = vpack.c.bf16 %v1190_v28, %v2303_v48  ;;  %v1616_v23 = vpack.c.bf16 %v1614_v0, %v2305_v51  ;;  %v968_v48 = vsel %vm2378_vm10, 0, %v966_v6  ;;  %v1171_v51 = vsub.s32 4, %v2364_v4 }
 0x4d6   : > { %v1164_v7 = vor.u32 4788187, %v1163_v31  ;;  %v1167_v17 = vcvt.s32.f32 %v1160_v61  ;;  %v1393_v19 = vadd.s32 3, %v968_v48  ;;  %v972_v15 = vand.u32 3, %v968_v48 }
 0x4d7   : > { %1194 = vst [vmem:[%s2394_s8] sm:$0xff] %v1192_v27  ;;  %1618 = vst [vmem:[%s2400_s11] sm:$0xff] %v1616_v23  ;;  %v1172_v30 = vsel %vm1087_vm3, %v1171_v51, %v2364_v4  ;;  %v1892_v4 = vld [vmem:[%s1972_s25] sm:$0xff]  ;;  %v507_v20 = vadd.f32 %v2075_v36, %v2367_v57  ;;  %vm1177_vm2 = vweird.f32 %v2184_v32 }
 0x4d8   : > { %v1165_v14 = vand.u32 2147483647, %v1164_v7  ;;  %v1394_v18 = vand.u32 3, %v1393_v19  ;;  %v1174_v44 = vsel %vm1086_vm4, 0, %v1172_v30  ;;  %vm974_vm5 = vcmp.eq.s32.totalorder %v972_v15, 0 }
 0x4d9   : > { %vm977_vm6 = vcmp.eq.s32.totalorder %v972_v15, 2  ;;  %v1601_v47 = vadd.s32 3, %v1174_v44  ;;  %v976_v54 = vsel %vm974_vm5, %v1884_v33, %v975_v29  ;;  %v236_v41 = vunpack.c.h.bf16 %v1892_v4 }
 0x4da   : > { %v1168_v43 = vmul.f32 %v1167_v17, %v1165_v14  ;;  %v979_v37 = vsel %vm977_vm6, %v978_v10, %v1886_v8  ;;  %vm1396_vm7 = vcmp.eq.s32.totalorder %v1394_v18, 0  ;;  %vm1399_vm8 = vcmp.eq.s32.totalorder %v1394_v18, 2 }
 0x4db   : > { %v1398_v21 = vsel %vm1396_vm7, %v1884_v33, %v975_v29  ;;  %v1401_v11 = vsel %vm1399_vm8, %v978_v10, %v1886_v8  ;;  %vm973_vm9 = vcmp.lt.s32.totalorder %v972_v15, 2  ;;  %vm1395_vm10 = vcmp.lt.s32.totalorder %v1394_v18, 2 }
 0x4dc   : > { %v1169_v26 = vxor.u32 2147483648, %v1168_v43  ;;  %v980_v38 = vsel %vm973_vm9, %v976_v54, %v979_v37  ;;  %v1178_v22 = vand.u32 3, %v1174_v44  ;;  %v1602_v39 = vand.u32 3, %v1601_v47 }
 0x4dd   : > { %v1402_v53 = vsel %vm1395_vm10, %v1398_v21, %v1401_v11  ;;  %v510_v1 = vadd.f32 %v501_v16, %v236_v41  ;;  %v981_v46 = vsel %vm971_vm11, nan, %v980_v38  ;;  %v512_v50 = vadd.f32 %v507_v20, %v238_v40 }
 0x4de   : > { %v1170_v13 = vsel %vm1087_vm3, %v1169_v26, %v1168_v43  ;;  %v1403_v49 = vsel %vm971_vm11, nan, %v1402_v53  ;;  %vm1183_vm12 = vcmp.eq.s32.totalorder %v1178_v22, 2  ;;  %vm1607_vm13 = vcmp.eq.s32.totalorder %v1602_v39, 2 }
 0x4df   : > { %v1173_v5 = vsel %vm1086_vm4, %v2184_v32, %v1170_v13  ;;  %vm1180_vm14 = vcmp.eq.s32.totalorder %v1178_v22, 0  ;;  %vm1604_vm15 = vcmp.eq.s32.totalorder %v1602_v39, 0  ;;  %vm1179_vm0 = vcmp.lt.s32.totalorder %v1178_v22, 2 }
 0x4e0   : > { %1887 = vcosq.f32 %v1173_v5  ;;  %vm1603_vm1 = vcmp.lt.s32.totalorder %v1602_v39, 2  ;;  %v1189_v63 = vmul.f32 %v981_v46, %v510_v1  ;;  %v1613_v56 = vmul.f32 %v1403_v49, %v510_v1 }
 0x4e1   : > { %1889 = vsinq.f32 %v1173_v5 }
 0x4ea   : > { %v1888_v12 = vpop.eup %1887 }
 0x4eb   : > { %v1890_v42 = vpop.eup %1889  ;;  %v1184_v9 = vxor.u32 2147483648, %v1888_v12 }
 0x4ec   : > { %v1181_v52 = vxor.u32 2147483648, %v1890_v42 }
 0x4ed   : > { %v1185_v60 = vsel %vm1183_vm12, %v1184_v9, %v1890_v42  ;;  %v1609_v35 = vsel %vm1607_vm13, %v1184_v9, %v1890_v42 }
 0x4ee   : > { %v1182_v34 = vsel %vm1180_vm14, %v1888_v12, %v1181_v52  ;;  %v1606_v45 = vsel %vm1604_vm15, %v1888_v12, %v1181_v52 }
 0x4ef   : > { %v1186_v36 = vsel %vm1179_vm0, %v1182_v34, %v1185_v60  ;;  %v1610_v57 = vsel %vm1603_vm1, %v1606_v45, %v1609_v35 }
 0x4f0   : > { %v1187_v55 = vsel %vm1177_vm2, nan, %v1186_v36  ;;  %v1611_v24 = vsel %vm1177_vm2, nan, %v1610_v57 }
 0x4f1   : > { %v1191_v59 = vmul.f32 %v1187_v55, %v512_v50  ;;  %v1615_v28 = vmul.f32 %v1611_v24, %v512_v50 }
 0x4f3   : > { %v1193_v0 = vpack.c.bf16 %v1191_v59, %v1189_v63  ;;  %v1617_v3 = vpack.c.bf16 %v1615_v28, %v1613_v56 }
 0x4f5   : > { %1195 = vst [vmem:[%s2394_s8 + $0x8] sm:$0xff] %v1193_v0  ;;  %1619 = vst [vmem:[%s2400_s11 + $0x8] sm:$0xff] %v1617_v3 }
 0x4f6 PF: > { %s15_s15 = sadd.s32 1, %s1899_s15  }
 0x4f7   : > { %p12_p4 = scmp.ge.s32.totalorder %s15_s15, 4  }
 0x4f9   :  { %14 = sbr.rel (!%p12_p4) target bundleno = 1 (0x1), region = 77 }

// kernel: reverse.1
= control target key start
LH: loop header
LB: loop body
LE: loop exit
PB: predicated region body
PF: predicated region fallthrough
CT: control target
= control target key end

     0   :  { %s344_s0 = inlined_call_operand.vmem [shape: f32[2,16,16,7], index: 0, kind: input, shape index: {}]   ;;  %s345_s1 = inlined_call_operand.vmem [shape: f32[2,16,16,7], index: 1, kind: output, shape index: {}]  }
   0x1   :  { %v112_v0 = vld [vmem:[%s344_s0 + $0x60] sm:$0xff]  ;;  %v113_v1 = vld [vmem:[%s344_s0 + $0xd0] sm:$0xff]  ;;  %v138_v14 = vld [vmem:[%s344_s0 + $0x68] sm:$0xff] }
   0x2   :  { %v115_v2 = vld [vmem:[%s344_s0 + $0x50] sm:$0xff]  ;;  %4 = vst [vmem:[%s345_s1] sm:$0xff] %v112_v0  ;;  %114 = vst [vmem:[%s345_s1 + $0x70] sm:$0xff] %v113_v1  ;;  %v117_v3 = vld [vmem:[%s344_s0 + $0xc0] sm:$0xff] }
   0x3   :  { %116 = vst [vmem:[%s345_s1 + $0x10] sm:$0xff] %v115_v2  ;;  %v119_v4 = vld [vmem:[%s344_s0 + $0x40] sm:$0xff]  ;;  %v121_v5 = vld [vmem:[%s344_s0 + $0xb0] sm:$0xff]  ;;  %118 = vst [vmem:[%s345_s1 + $0x80] sm:$0xff] %v117_v3 }
   0x4   :  { %120 = vst [vmem:[%s345_s1 + $0x20] sm:$0xff] %v119_v4  ;;  %122 = vst [vmem:[%s345_s1 + $0x90] sm:$0xff] %v121_v5  ;;  %v123_v6 = vld [vmem:[%s344_s0 + $0x30] sm:$0xff]  ;;  %v125_v7 = vld [vmem:[%s344_s0 + $0xa0] sm:$0xff] }
   0x5   :  { %v127_v8 = vld [vmem:[%s344_s0 + $0x20] sm:$0xff]  ;;  %124 = vst [vmem:[%s345_s1 + $0x30] sm:$0xff] %v123_v6  ;;  %126 = vst [vmem:[%s345_s1 + $0xa0] sm:$0xff] %v125_v7  ;;  %v129_v9 = vld [vmem:[%s344_s0 + $0x90] sm:$0xff] }
   0x6   :  { %128 = vst [vmem:[%s345_s1 + $0x40] sm:$0xff] %v127_v8  ;;  %v131_v10 = vld [vmem:[%s344_s0 + $0x10] sm:$0xff]  ;;  %v133_v11 = vld [vmem:[%s344_s0 + $0x80] sm:$0xff]  ;;  %130 = vst [vmem:[%s345_s1 + $0xb0] sm:$0xff] %v129_v9 }
   0x7   :  { %132 = vst [vmem:[%s345_s1 + $0x50] sm:$0xff] %v131_v10  ;;  %134 = vst [vmem:[%s345_s1 + $0xc0] sm:$0xff] %v133_v11  ;;  %v49_v12 = vld [vmem:[%s344_s0] sm:$0xff]  ;;  %v136_v13 = vld [vmem:[%s344_s0 + $0x70] sm:$0xff] }
   0x8   :  { %135 = vst [vmem:[%s345_s1 + $0x60] sm:$0xff] %v49_v12  ;;  %137 = vst [vmem:[%s345_s1 + $0xd0] sm:$0xff] %v136_v13  ;;  %v140_v15 = vld [vmem:[%s344_s0 + $0xd8] sm:$0xff]  ;;  %v144_v17 = vld [vmem:[%s344_s0 + $0xc8] sm:$0xff] }
   0x9   :  { %139 = vst [vmem:[%s345_s1 + $0x8] sm:$0xff] %v138_v14  ;;  %v142_v16 = vld [vmem:[%s344_s0 + $0x58] sm:$0xff]  ;;  %141 = vst [vmem:[%s345_s1 + $0x78] sm:$0xff] %v140_v15  ;;  %v146_v18 = vld [vmem:[%s344_s0 + $0x48] sm:$0xff] }
   0xa   :  { %143 = vst [vmem:[%s345_s1 + $0x18] sm:$0xff] %v142_v16  ;;  %145 = vst [vmem:[%s345_s1 + $0x88] sm:$0xff] %v144_v17  ;;  %v148_v19 = vld [vmem:[%s344_s0 + $0xb8] sm:$0xff]  ;;  %v152_v21 = vld [vmem:[%s344_s0 + $0xa8] sm:$0xff] }
   0xb   :  { %v150_v20 = vld [vmem:[%s344_s0 + $0x38] sm:$0xff]  ;;  %147 = vst [vmem:[%s345_s1 + $0x28] sm:$0xff] %v146_v18  ;;  %149 = vst [vmem:[%s345_s1 + $0x98] sm:$0xff] %v148_v19  ;;  %v154_v22 = vld [vmem:[%s344_s0 + $0x28] sm:$0xff] }
   0xc   :  { %151 = vst [vmem:[%s345_s1 + $0x38] sm:$0xff] %v150_v20  ;;  %v156_v23 = vld [vmem:[%s344_s0 + $0x98] sm:$0xff]  ;;  %153 = vst [vmem:[%s345_s1 + $0xa8] sm:$0xff] %v152_v21  ;;  %v160_v25 = vld [vmem:[%s344_s0 + $0x88] sm:$0xff] }
   0xd   :  { %155 = vst [vmem:[%s345_s1 + $0x48] sm:$0xff] %v154_v22  ;;  %157 = vst [vmem:[%s345_s1 + $0xb8] sm:$0xff] %v156_v23  ;;  %v158_v24 = vld [vmem:[%s344_s0 + $0x18] sm:$0xff]  ;;  %v162_v26 = vld [vmem:[%s344_s0 + $0x8] sm:$0xff] }
   0xe   :  { %159 = vst [vmem:[%s345_s1 + $0x58] sm:$0xff] %v158_v24  ;;  %161 = vst [vmem:[%s345_s1 + $0xc8] sm:$0xff] %v160_v25  ;;  %v164_v27 = vld [vmem:[%s344_s0 + $0x78] sm:$0xff] }
   0xf   :  { %163 = vst [vmem:[%s345_s1 + $0x68] sm:$0xff] %v162_v26  ;;  %165 = vst [vmem:[%s345_s1 + $0xd8] sm:$0xff] %v164_v27 }

</bundles_post_ra>
